<compile_context>
chip_gen: v5e
topology: v5e:2x2
jax: 0.10.0
libtpu: 0.0.40
codegen_flags: <defaults>
</compile_context>

<pallas_src>
import jax
import jax.numpy as jnp
from jax.experimental import pallas as pl
from jax.experimental.pallas import tpu as pltpu

HID1 = 250   # first hidden width of the PyTorch MLP
HID2 = 100   # second hidden width (returned as h_2)

LANE = 128
BATCH_ALIGN = 16            # multiple of 8 (f32 sublane) and 16 (bf16 packing)
MAX_TM = 2048               # batch-tile upper bound
VMEM_TILE_BUDGET = 8 << 20  # budget for double-buffered activation tiles


def _round_up(x, m):
    return ((x + m - 1) // m) * m


# --------------------------------------------------------------------------
# Kernel: one batch tile does the full 3-layer MLP on the MXU (f32 accumulate)
# --------------------------------------------------------------------------
def mlp_kernel(x_ref, w1_ref, b1_ref, w2_ref, b2_ref, w3_ref, b3_ref,
               y_ref, h2_ref):
    # x arrives f32 at logical width; cast to bf16 (MXU-native) on the VPU.
    x = x_ref[...].astype(jnp.bfloat16)

    # Layer 1: Linear(in_dim -> 256 padded) + ReLU   (padded cols are exactly 0)
    h1 = jnp.dot(x, w1_ref[...], preferred_element_type=jnp.float32)
    h1 = jnp.maximum(h1 + b1_ref[...], 0.0)

    # Layer 2: Linear(256 -> 128 padded) + ReLU      (padded cols are exactly 0)
    h2 = jnp.dot(h1.astype(jnp.bfloat16), w2_ref[...],
                 preferred_element_type=jnp.float32)
    h2 = jnp.maximum(h2 + b2_ref[...], 0.0)

    # Layer 3: Linear(128 -> out_dim), no activation, logical output width.
    y = jnp.dot(h2.astype(jnp.bfloat16), w3_ref[...],
                preferred_element_type=jnp.float32) + b3_ref[...]

    y_ref[...] = y.astype(y_ref.dtype)       # (tm, out_dim) f32
    h2_ref[...] = h2.astype(h2_ref.dtype)    # (tm, 128) bf16


# --------------------------------------------------------------------------
# Parameter padding: only the hidden dims are lane-padded (250->256, 100->128);
# input_dim and output_dim stay logical (Mosaic pads MXU tiles in VMEM).
# --------------------------------------------------------------------------
def _pad2d(a, rows, cols, dtype):
    out = jnp.zeros((rows, cols), dtype)
    return out.at[:a.shape[0], :a.shape[1]].set(a.astype(dtype))


def pad_params(params):
    w1, b1, w2, b2, w3, b3 = params
    in_dim = w1.shape[0]
    out_dim = w3.shape[1]
    h1_p = _round_up(HID1, LANE)   # 256
    h2_p = _round_up(HID2, LANE)   # 128

    w1p = _pad2d(w1, in_dim, h1_p, jnp.bfloat16)
    w2p = _pad2d(w2, h1_p, h2_p, jnp.bfloat16)
    w3p = _pad2d(w3, h2_p, out_dim, jnp.bfloat16)
    b1p = _pad2d(b1, 1, h1_p, jnp.float32)
    b2p = _pad2d(b2, 1, h2_p, jnp.float32)
    b3p = b3.reshape(1, out_dim).astype(jnp.float32)
    return w1p, b1p, w2p, b2p, w3p, b3p


# --------------------------------------------------------------------------
# Batch tiling: big tiles (amortize per-step overhead), VMEM-budget capped,
# >= 2 (even) grid steps for large batches so both v7x TensorCores run.
# --------------------------------------------------------------------------
def _max_batch_tile(in_dim, out_dim):
    per_row = (_round_up(in_dim, LANE) * 4      # x tile (f32, lane-padded in VMEM)
               + _round_up(out_dim, LANE) * 4   # y tile (f32, lane-padded in VMEM)
               + _round_up(HID2, LANE) * 2)     # h2 tile (bf16)
    tm = VMEM_TILE_BUDGET // (2 * per_row)      # 2 = double buffering
    tm = max(BATCH_ALIGN, (tm // BATCH_ALIGN) * BATCH_ALIGN)
    return min(MAX_TM, tm)


def _choose_batch_tiling(batch, max_tm):
    b_al = _round_up(batch, BATCH_ALIGN)
    n = pl.cdiv(b_al, max_tm)
    if n == 1 and b_al >= 4 * BATCH_ALIGN:
        n = 2                       # give v7x's 2nd TensorCore work
    if n > 1 and n % 2 == 1:
        n += 1                      # even split balances the two cores
    tm = _round_up(pl.cdiv(b_al, n), BATCH_ALIGN)
    return tm, tm * n, n


# --------------------------------------------------------------------------
# Forward wrapper
# --------------------------------------------------------------------------
@jax.jit
def mlp_forward(x, params):
    """x: (B, input_dim) f32 -> (y_pred (B, output_dim) f32, h_2 (B, 100) f32)."""
    w1p, b1p, w2p, b2p, w3p, b3p = pad_params(params)
    B, in_dim = x.shape
    h1_p = w1p.shape[1]      # 256
    h2_p = w2p.shape[1]      # 128
    out_dim = w3p.shape[1]   # logical output width

    tm, b_pad, n_steps = _choose_batch_tiling(B, _max_batch_tile(in_dim, out_dim))

    # Only the batch dim is padded (lane dims stay logical for x and y).
    xp = x if b_pad == B else jnp.zeros((b_pad, in_dim), x.dtype).at[:B].set(x)

    flops = 2 * b_pad * (in_dim * h1_p + h1_p * h2_p + h2_p * out_dim)
    bytes_accessed = (
        b_pad * in_dim * 4                                    # x (f32, logical)
        + (in_dim * h1_p + h1_p * h2_p + h2_p * out_dim) * 2  # weights (bf16)
        + (h1_p + h2_p + out_dim) * 4                         # biases (f32)
        + b_pad * (out_dim * 4 + h2_p * 2)                    # y f32 + h2 bf16
    )

    y_raw, h2_raw = pl.pallas_call(
        mlp_kernel,
        out_shape=(
            jax.ShapeDtypeStruct((b_pad, out_dim), jnp.float32),  # y (logical width)
            jax.ShapeDtypeStruct((b_pad, h2_p), jnp.bfloat16),    # h_2 (128 lanes)
        ),
        grid=(n_steps,),
        in_specs=[
            pl.BlockSpec((tm, in_dim), lambda i: (i, 0)),    # x: tiled over batch
            # Weights/biases: constant block index -> fetched once, stay
            # VMEM-resident across all grid steps (~0.2 MiB total).
            pl.BlockSpec((in_dim, h1_p), lambda i: (0, 0)),
            pl.BlockSpec((1, h1_p), lambda i: (0, 0)),
            pl.BlockSpec((h1_p, h2_p), lambda i: (0, 0)),
            pl.BlockSpec((1, h2_p), lambda i: (0, 0)),
            pl.BlockSpec((h2_p, out_dim), lambda i: (0, 0)),
            pl.BlockSpec((1, out_dim), lambda i: (0, 0)),
        ],
        out_specs=(
            pl.BlockSpec((tm, out_dim), lambda i: (i, 0)),
            pl.BlockSpec((tm, h2_p), lambda i: (i, 0)),
        ),
        compiler_params=pltpu.CompilerParams(
            dimension_semantics=("parallel",),   # shard batch over v7x's 2 TCs
            vmem_limit_bytes=32 << 20,           # safe on v5e/v6e/v7x
        ),
        cost_estimate=pl.CostEstimate(
            flops=flops, transcendentals=0, bytes_accessed=bytes_accessed),
    )(xp, w1p, b1p, w2p, b2p, w3p, b3p)

    y_pred = y_raw if b_pad == B else y_raw[:B]
    h_2 = h2_raw[:B, :HID2].astype(jnp.float32)
    return y_pred, h_2


# --------------------------------------------------------------------------
# Deterministic synthetic parameters (torch.nn.Linear-like uniform init),
# stored as logical (in, out) f32; padding/casting happens in pad_params.
# --------------------------------------------------------------------------
def init_params(key, input_dim, output_dim):
    ks = jax.random.split(key, 6)

    def uniform(k, shape, fan_in):
        bound = 1.0 / jnp.sqrt(jnp.float32(fan_in))
        return jax.random.uniform(k, shape, jnp.float32, -bound, bound)

    w1 = uniform(ks[0], (input_dim, HID1), input_dim)
    b1 = uniform(ks[1], (1, HID1), input_dim)
    w2 = uniform(ks[2], (HID1, HID2), HID1)
    b2 = uniform(ks[3], (1, HID2), HID1)
    w3 = uniform(ks[4], (HID2, output_dim), HID2)
    b3 = uniform(ks[5], (1, output_dim), HID2)
    return (w1, b1, w2, b2, w3, b3)


if __name__ == "__main__":
    key = jax.random.PRNGKey(0)
    k_x, k_p = jax.random.split(key)

    batch, input_dim, output_dim = 8, 32, 10
    x = jax.random.normal(k_x, (batch, input_dim), jnp.float32)
    params = init_params(k_p, input_dim, output_dim)

    y_pred, h_2 = jax.block_until_ready(mlp_forward(x, params))

    # Reference check in plain JAX (f32).  bf16 matmul inputs + bf16 h_2 store
    # deviate from the f32 reference by <~1e-2 relative (within tolerance).
    w1, b1, w2, b2, w3, b3 = params
    h1_ref = jnp.maximum(x @ w1 + b1, 0.0)
    h2_ref = jnp.maximum(h1_ref @ w2 + b2, 0.0)
    y_ref = h2_ref @ w3 + b3

    assert y_pred.shape == (batch, output_dim) and y_pred.dtype == jnp.float32
    assert h_2.shape == (batch, HID2) and h_2.dtype == jnp.float32
    assert jnp.allclose(y_pred, y_ref, atol=2e-2, rtol=2e-2), (
        float(jnp.max(jnp.abs(y_pred - y_ref))))
    assert jnp.allclose(h_2, h2_ref, atol=2e-2, rtol=2e-2), (
        float(jnp.max(jnp.abs(h_2 - h2_ref))))

    print("KERNEL_OK")
</pallas_src>

<mosaic_0001>
module attributes {stable_mosaic.version = 11 : i64} {
  func.func @mlp_kernel(%arg0: i32, %arg1: memref<16x32xf32, #tpu.memory_space<vmem>>, %arg2: memref<32x256xbf16, #tpu.memory_space<vmem>>, %arg3: memref<1x256xf32, #tpu.memory_space<vmem>>, %arg4: memref<256x128xbf16, #tpu.memory_space<vmem>>, %arg5: memref<1x128xf32, #tpu.memory_space<vmem>>, %arg6: memref<128x10xbf16, #tpu.memory_space<vmem>>, %arg7: memref<1x10xf32, #tpu.memory_space<vmem>>, %arg8: memref<16x10xf32, #tpu.memory_space<vmem>>, %arg9: memref<16x128xbf16, #tpu.memory_space<vmem>>) attributes {dimension_semantics = [#tpu.dimension_semantics<parallel>], iteration_bounds = array<i64: 1>, scalar_prefetch = 0 : i64, scratch_operands = 0 : i64, tpu.core_type = #tpu.core_type<tc>, window_params = [{transform_indices = @transform_0, window_bounds = array<i64: 16, 32>}, {pipeline_mode = #tpu.pipeline_mode<synchronous>, transform_indices = @transform_1, window_bounds = array<i64: 32, 256>}, {pipeline_mode = #tpu.pipeline_mode<synchronous>, transform_indices = @transform_2, window_bounds = array<i64: 1, 256>}, {pipeline_mode = #tpu.pipeline_mode<synchronous>, transform_indices = @transform_3, window_bounds = array<i64: 256, 128>}, {pipeline_mode = #tpu.pipeline_mode<synchronous>, transform_indices = @transform_4, window_bounds = array<i64: 1, 128>}, {pipeline_mode = #tpu.pipeline_mode<synchronous>, transform_indices = @transform_5, window_bounds = array<i64: 128, 10>}, {pipeline_mode = #tpu.pipeline_mode<synchronous>, transform_indices = @transform_6, window_bounds = array<i64: 1, 10>}, {transform_indices = @transform_7, window_bounds = array<i64: 16, 10>}, {transform_indices = @transform_8, window_bounds = array<i64: 16, 128>}]} {
    %c0 = arith.constant 0 : index
    %c0_0 = arith.constant 0 : index
    %0 = vector.load %arg1[%c0, %c0_0] : memref<16x32xf32, #tpu.memory_space<vmem>>, vector<16x32xf32>
    %1 = arith.truncf %0 : vector<16x32xf32> to vector<16x32xbf16>
    %c0_1 = arith.constant 0 : index
    %c0_2 = arith.constant 0 : index
    %2 = vector.load %arg2[%c0_1, %c0_2] : memref<32x256xbf16, #tpu.memory_space<vmem>>, vector<32x256xbf16>
    %cst = arith.constant dense<0.000000e+00> : vector<16x256xf32>
    %3 = tpu.matmul %1, %2, %cst {dimension_numbers = #tpu.dot_dimension_numbers<[1], [0], [0], [1], [0, 0, 1, 1], [], []>} : vector<16x32xbf16>, vector<32x256xbf16>, vector<16x256xf32> -> vector<16x256xf32>
    %c0_3 = arith.constant 0 : index
    %c0_4 = arith.constant 0 : index
    %4 = vector.load %arg3[%c0_3, %c0_4] : memref<1x256xf32, #tpu.memory_space<vmem>>, vector<1x256xf32>
    %5 = vector.broadcast %4 : vector<1x256xf32> to vector<16x256xf32>
    %6 = arith.addf %3, %5 : vector<16x256xf32>
    %cst_5 = arith.constant 0.000000e+00 : f32
    %7 = vector.broadcast %cst_5 : f32 to vector<16x256xf32>
    %8 = arith.maximumf %6, %7 : vector<16x256xf32>
    %9 = arith.truncf %8 : vector<16x256xf32> to vector<16x256xbf16>
    %c0_6 = arith.constant 0 : index
    %c0_7 = arith.constant 0 : index
    %10 = vector.load %arg4[%c0_6, %c0_7] : memref<256x128xbf16, #tpu.memory_space<vmem>>, vector<256x128xbf16>
    %cst_8 = arith.constant dense<0.000000e+00> : vector<16x128xf32>
    %11 = tpu.matmul %9, %10, %cst_8 {dimension_numbers = #tpu.dot_dimension_numbers<[1], [0], [0], [1], [0, 0, 1, 1], [], []>} : vector<16x256xbf16>, vector<256x128xbf16>, vector<16x128xf32> -> vector<16x128xf32>
    %c0_9 = arith.constant 0 : index
    %c0_10 = arith.constant 0 : index
    %12 = vector.load %arg5[%c0_9, %c0_10] : memref<1x128xf32, #tpu.memory_space<vmem>>, vector<1x128xf32>
    %13 = vector.broadcast %12 : vector<1x128xf32> to vector<16x128xf32>
    %14 = arith.addf %11, %13 : vector<16x128xf32>
    %cst_11 = arith.constant 0.000000e+00 : f32
    %15 = vector.broadcast %cst_11 : f32 to vector<16x128xf32>
    %16 = arith.maximumf %14, %15 : vector<16x128xf32>
    %17 = arith.truncf %16 : vector<16x128xf32> to vector<16x128xbf16>
    %c0_12 = arith.constant 0 : index
    %c0_13 = arith.constant 0 : index
    %18 = vector.load %arg6[%c0_12, %c0_13] : memref<128x10xbf16, #tpu.memory_space<vmem>>, vector<128x10xbf16>
    %cst_14 = arith.constant dense<0.000000e+00> : vector<16x10xf32>
    %19 = tpu.matmul %17, %18, %cst_14 {dimension_numbers = #tpu.dot_dimension_numbers<[1], [0], [0], [1], [0, 0, 1, 1], [], []>} : vector<16x128xbf16>, vector<128x10xbf16>, vector<16x10xf32> -> vector<16x10xf32>
    %c0_15 = arith.constant 0 : index
    %c0_16 = arith.constant 0 : index
    %20 = vector.load %arg7[%c0_15, %c0_16] : memref<1x10xf32, #tpu.memory_space<vmem>>, vector<1x10xf32>
    %21 = vector.broadcast %20 : vector<1x10xf32> to vector<16x10xf32>
    %22 = arith.addf %19, %21 : vector<16x10xf32>
    %c0_17 = arith.constant 0 : index
    %c0_18 = arith.constant 0 : index
    %23 = vector.load %arg8[%c0_17, %c0_18] : memref<16x10xf32, #tpu.memory_space<vmem>>, vector<16x10xf32>
    tpu.vector_store %arg8[%c0_17, %c0_18], %22 {strides = array<i32>} : memref<16x10xf32, #tpu.memory_space<vmem>>, vector<16x10xf32>,
    %24 = arith.truncf %16 : vector<16x128xf32> to vector<16x128xbf16>
    %c0_19 = arith.constant 0 : index
    %c0_20 = arith.constant 0 : index
    %25 = vector.load %arg9[%c0_19, %c0_20] : memref<16x128xbf16, #tpu.memory_space<vmem>>, vector<16x128xbf16>
    tpu.vector_store %arg9[%c0_19, %c0_20], %24 {strides = array<i32>} : memref<16x128xbf16, #tpu.memory_space<vmem>>, vector<16x128xbf16>,
    return
  }
  func.func @transform_0(%arg0: i32) -> (i32, i32) {
    %c0_i32 = arith.constant 0 : i32
    %c0_i32_0 = arith.constant 0 : i32
    return %arg0, %c0_i32 : i32, i32
  }
  func.func @transform_1(%arg0: i32) -> (i32, i32) {
    %c0_i32 = arith.constant 0 : i32
    %c0_i32_0 = arith.constant 0 : i32
    %c0_i32_1 = arith.constant 0 : i32
    return %c0_i32, %c0_i32_0 : i32, i32
  }
  func.func @transform_2(%arg0: i32) -> (i32, i32) {
    %c0_i32 = arith.constant 0 : i32
    %c0_i32_0 = arith.constant 0 : i32
    %c0_i32_1 = arith.constant 0 : i32
    return %c0_i32, %c0_i32_0 : i32, i32
  }
  func.func @transform_3(%arg0: i32) -> (i32, i32) {
    %c0_i32 = arith.constant 0 : i32
    %c0_i32_0 = arith.constant 0 : i32
    %c0_i32_1 = arith.constant 0 : i32
    return %c0_i32, %c0_i32_0 : i32, i32
  }
  func.func @transform_4(%arg0: i32) -> (i32, i32) {
    %c0_i32 = arith.constant 0 : i32
    %c0_i32_0 = arith.constant 0 : i32
    %c0_i32_1 = arith.constant 0 : i32
    return %c0_i32, %c0_i32_0 : i32, i32
  }
  func.func @transform_5(%arg0: i32) -> (i32, i32) {
    %c0_i32 = arith.constant 0 : i32
    %c0_i32_0 = arith.constant 0 : i32
    %c0_i32_1 = arith.constant 0 : i32
    return %c0_i32, %c0_i32_0 : i32, i32
  }
  func.func @transform_6(%arg0: i32) -> (i32, i32) {
    %c0_i32 = arith.constant 0 : i32
    %c0_i32_0 = arith.constant 0 : i32
    %c0_i32_1 = arith.constant 0 : i32
    return %c0_i32, %c0_i32_0 : i32, i32
  }
  func.func @transform_7(%arg0: i32) -> (i32, i32) {
    %c0_i32 = arith.constant 0 : i32
    %c0_i32_0 = arith.constant 0 : i32
    return %arg0, %c0_i32 : i32, i32
  }
  func.func @transform_8(%arg0: i32) -> (i32, i32) {
    %c0_i32 = arith.constant 0 : i32
    %c0_i32_0 = arith.constant 0 : i32
    return %arg0, %c0_i32 : i32, i32
  }
}

</mosaic_0001>

<bundles_post_ra>
// kernel: mlp_forward.1
= control target key start
LH: loop header
LB: loop body
LE: loop exit
PB: predicated region body
PF: predicated region fallthrough
CT: control target
= control target key end

     0   :  { %vm62_vm0 = vcmask 261120   ;;  %vm352_vm1 = vcmask 80896   ;;  %s679_s1 = inlined_call_operand.vmem [shape: bf16[32,256], index: 1, kind: input, shape index: {}]   ;;  %s680_s0 = inlined_call_operand.vmem [shape: f32[16,32], index: 0, kind: input, shape index: {}]   ;;  %s681_s3 = inlined_call_operand.vmem [shape: bf16[256,128], index: 3, kind: input, shape index: {}]   ;;  %s682_s4 = inlined_call_operand.vmem [shape: f32[1,128], index: 4, kind: input, shape index: {}]   ;;  %s683_s2 = inlined_call_operand.vmem [shape: f32[1,256], index: 2, kind: input, shape index: {}]   ;;  %s684_s6 = inlined_call_operand.vmem [shape: f32[1,10], index: 6, kind: input, shape index: {}]   ;;  %s685_s5 = inlined_call_operand.vmem [shape: bf16[128,10], index: 5, kind: input, shape index: {}]   ;;  %s686_s8 = inlined_call_operand.vmem [shape: bf16[16,128], index: 8, kind: output, shape index: {1}]   ;;  %s687_s7 = inlined_call_operand.vmem [shape: f32[16,10], index: 7, kind: output, shape index: {0}]  }
   0x1   :  { %v375_v0 = vld [vmem:[%s679_s1 + $0x10] sm:$0xf]  ;;  %v482_v1 = vld [vmem:[%s679_s1 + $0x14] sm:$0xf0]  ;;  %v367_v2 = vld [vmem:[%s679_s1] sm:$0xf] }
   0x2   :  { %v376_v3 = vor.u32 %v482_v1, %v375_v0  ;;  %v480_v4 = vld [vmem:[%s679_s1 + $0x4] sm:$0xf0]  ;;  %v481_v5 = vld [vmem:[%s679_s1 + $0x14] sm:$0xf]  ;;  %v377_v6 = vld [vmem:[%s679_s1 + $0x18] sm:$0xf0] }
   0x3   :  { %v368_v7 = vor.u32 %v480_v4, %v367_v2  ;;  %v29_v8 = vld [vmem:[%s680_s0] sm:$0xff]  ;;  %v30_v9 = vld [vmem:[%s680_s0 + $0x8] sm:$0xff]  ;;  %v490_v10 = vld [vmem:[%s681_s3 + $0x38] sm:$0xff]  ;;  %v380_v11 = vor.u32 %v481_v5, %v377_v6 }
   0x4   :  { %72 = vmatpush.bf16.msra.mxu1 %v376_v3  ;;  %v479_v12 = vld [vmem:[%s679_s1 + $0x4] sm:$0xf]  ;;  %v369_v13 = vld [vmem:[%s679_s1 + $0x8] sm:$0xf0]  ;;  %232 = vmatpush.bf16.msra.mxu2 %v490_v10  ;;  %v489_v14 = vld [vmem:[%s681_s3 + $0x30] sm:$0xff]  ;;  %v31_v15 = vpack.c.bf16 %v30_v9, %v29_v8 }
   0x5   :  { %v372_v16 = vor.u32 %v479_v12, %v369_v13  ;;  %v488_v17 = vld [vmem:[%s681_s3 + $0x28] sm:$0xff]  ;;  %v487_v18 = vld [vmem:[%s681_s3 + $0x20] sm:$0xff]  ;;  %v486_v19 = vld [vmem:[%s681_s3 + $0x18] sm:$0xff] }
   0x6   :  { %v498_v20 = vld [vmem:[%s681_s3 + $0x78] sm:$0xff]  ;;  %v485_v21 = vld [vmem:[%s681_s3 + $0x10] sm:$0xff]  ;;  %v484_v23 = vld [vmem:[%s681_s3 + $0x8] sm:$0xff] }
   0x7   :  { %246 = vmatpush.bf16.msra.mxu3 %v498_v20  ;;  %v497_v22 = vld [vmem:[%s681_s3 + $0x70] sm:$0xff]  ;;  %v496_v24 = vld [vmem:[%s681_s3 + $0x68] sm:$0xff]  ;;  %v483_v25 = vld [vmem:[%s681_s3] sm:$0xff] }
   0x8   :  { %73 = vmatpush.bf16.msra.mxu1 %v368_v7  ;;  %233 = vmatpush.bf16.msra.mxu2 %v489_v14  ;;  %v495_v26 = vld [vmem:[%s681_s3 + $0x60] sm:$0xff]  ;;  %v494_v27 = vld [vmem:[%s681_s3 + $0x58] sm:$0xff]  ;;  %v493_v28 = vld [vmem:[%s681_s3 + $0x50] sm:$0xff] }
   0x9   :  { %v492_v29 = vld [vmem:[%s681_s3 + $0x48] sm:$0xff]  ;;  %v491_v30 = vld [vmem:[%s681_s3 + $0x40] sm:$0xff]  ;;  %v506_v48 = vld [vmem:[%s685_s5 + $0x38] sm:$0xff] }
   0xa   :  { %v36_v31 = vld [vmem:[%s683_s2] sm:$0x3]  ;;  %338 = vmatpush.bf16.msra.mxu0 %v506_v48  ;;  %v505_v49 = vld [vmem:[%s685_s5 + $0x30] sm:$0xff]  ;;  %v504_v50 = vld [vmem:[%s685_s5 + $0x28] sm:$0xff] }
   0xb   :  { %381 = vmatmul.msk.bf16.vlgmr.msra.gmra.mxu1 %vm62_vm0, %v31_v15  ;;  %247 = vmatpush.bf16.msra.mxu3 %v497_v22  ;;  %v38_v33 = vperm.slane %v36_v31, 0  ;;  %v39_v41 = vperm.slane %v36_v31, 1  ;;  %v503_v51 = vld [vmem:[%s685_s5 + $0x20] sm:$0xff]  ;;  %v502_v52 = vld [vmem:[%s685_s5 + $0x18] sm:$0xff]  ;;  %v501_v53 = vld [vmem:[%s685_s5 + $0x10] sm:$0xff] }
   0xc   :  { %86 = vmatpush.bf16.msrb.mxu1 %v380_v11  ;;  %234 = vmatpush.bf16.msra.mxu2 %v488_v17  ;;  %v500_v54 = vld [vmem:[%s685_s5 + $0x8] sm:$0xff]  ;;  %v499_v55 = vld [vmem:[%s685_s5] sm:$0xff] }
   0xd   :  { %v512_v57 = vld [vmem:[%s682_s4] ss:$0 sm:$0xff] }
   0xe   :  { %339 = vmatpush.bf16.msra.mxu0 %v505_v49  ;;  %v513_v9 = vld [vmem:[%s684_s6] ss:$0 sm:$0xff] }
   0xf   :  { %248 = vmatpush.bf16.msra.mxu3 %v496_v24 }
  0x10   :  { %87 = vmatpush.bf16.msrb.mxu1 %v372_v16  ;;  %235 = vmatpush.bf16.msra.mxu2 %v487_v18 }
  0x12   :  { %340 = vmatpush.bf16.msra.mxu0 %v504_v50 }
  0x13   :  { %249 = vmatpush.bf16.msra.mxu3 %v495_v26 }
  0x14   :  { %236 = vmatpush.bf16.msra.mxu2 %v486_v19 }
  0x16   :  { %341 = vmatpush.bf16.msra.mxu0 %v503_v51 }
  0x17   :  { %250 = vmatpush.bf16.msra.mxu3 %v494_v27 }
  0x18   :  { %237 = vmatpush.bf16.msra.mxu2 %v485_v21 }
  0x1a   :  { %342 = vmatpush.bf16.msra.mxu0 %v502_v52 }
  0x1b   :  { %382 = vmatmul.msk.bf16.vlgmr.msrb.gmra.mxu1 %vm62_vm0, %v31_v15  ;;  %251 = vmatpush.bf16.msra.mxu3 %v493_v28 }
  0x1c   :  { %238 = vmatpush.bf16.msra.mxu2 %v484_v23 }
  0x1e   :  { %343 = vmatpush.bf16.msra.mxu0 %v501_v53 }
  0x1f   :  { %252 = vmatpush.bf16.msra.mxu3 %v492_v29 }
  0x20   :  { %239 = vmatpush.bf16.msra.mxu2 %v483_v25 }
  0x22   :  { %344 = vmatpush.bf16.msra.mxu0 %v500_v54 }
  0x23   :  { %253 = vmatpush.bf16.msra.mxu3 %v491_v30 }
  0x26   :  { %345 = vmatpush.bf16.msra.mxu0 %v499_v55 }
  0x88   :  { %v75_v32 = vpop.f32.mrf.mxu1 }
  0x89   :  { %v76_v34 = vadd.f32 %v75_v32, %v38_v33 }
  0x8b   :  { %v94_v37 = vmax.f32 %v76_v34, 0.0 }
  0x90   :  { %v77_v35 = vpop.f32.mrf.mxu1 }
  0x91   :  { %v78_v36 = vadd.f32 %v77_v35, %v38_v33 }
  0x93   :  { %v96_v38 = vmax.f32 %v78_v36, 0.0 }
  0x95   :  { %v98_v39 = vpack.c.bf16 %v96_v38, %v94_v37 }
  0x97   :  { %240 = vmatmul.bf16.vlgmr.msra.gmra.mxu2 %v98_v39 }
  0x98   :  { %v89_v40 = vpop.f32.mrf.mxu1 }
  0x99   :  { %v90_v42 = vadd.f32 %v89_v40, %v39_v41 }
  0x9b   :  { %v95_v45 = vmax.f32 %v90_v42, 0.0 }
  0xa0   :  { %v91_v43 = vpop.f32.mrf.mxu1 }
  0xa1   :  { %v92_v44 = vadd.f32 %v91_v43, %v39_v41 }
  0xa3   :  { %v97_v46 = vmax.f32 %v92_v44, 0.0 }
  0xa5   :  { %v99_v47 = vpack.c.bf16 %v97_v46, %v95_v45 }
  0xa7   :  { %254 = vmatmul.bf16.vlgmr.msra.gmra.mxu3 %v99_v47 }
 0x11a   :  { %v241_v56 = vpop.f32.mrf.mxu2 }
 0x11b   :  { %v242_v59 = vadd.f32 %v512_v57, %v241_v56 }
 0x122   :  { %v243_v61 = vpop.f32.mrf.mxu2 }
 0x123   :  { %v244_v62 = vadd.f32 %v512_v57, %v243_v61 }
 0x12a   :  { %v255_v58 = vpop.f32.mrf.mxu3 }
 0x12b   :  { %v256_v60 = vadd.f32 %v255_v58, %v242_v59 }
 0x12d   :  { %v260_v63 = vmax.f32 %v256_v60, 0.0 }
 0x12f   :  { %v262_v2 = vpack.c.bf16 %v260_v63, %v260_v63 }
 0x131   :  { %v286_v6 = vunpack.c.l.b16 %v262_v2 }
 0x132   :  { %v257_v0 = vpop.f32.mrf.mxu3 }
 0x133   :  { %v258_v1 = vadd.f32 %v257_v0, %v244_v62 }
 0x135   :  { %v261_v3 = vmax.f32 %v258_v1, 0.0 }
 0x137   :  { %v263_v4 = vpack.c.bf16 %v261_v3, %v261_v3  ;;  %v510_v5 = vpack.c.bf16 %v261_v3, %v260_v63 }
 0x139   :  { %511 = vst [vmem:[%s686_s8] sm:$0xff] %v510_v5   ;;  %v287_v7 = vunpack.c.l.b16 %v263_v4 }
 0x13b   :  { %v288_v8 = vpack.c.b16 %v287_v7, %v286_v6 }
 0x13d   :  { %346 = vmatmul.bf16.vlgmr.msra.gmra.mxu0 %v288_v8 }
 0x1ba   :  { %v347_v10 = vpop.f32.mrf.mxu0 }
 0x1bb   :  { %v348_v11 = vadd.f32 %v513_v9, %v347_v10 }
 0x1bd   :  { %353 = vst.msk [vmem:[%s687_s7] sm:$0xff] %vm352_vm1, %v348_v11 }
 0x1c2   :  { %v349_v12 = vpop.f32.mrf.mxu0 }
 0x1c3   :  { %v350_v13 = vadd.f32 %v513_v9, %v349_v12 }
 0x1c5   :  { %354 = vst.msk [vmem:[%s687_s7 + $0x8] sm:$0xff] %vm352_vm1, %v350_v13 }

</bundles_post_ra>
